<compile_context>
chip_gen: v5e
topology: v5e:2x2
jax: 0.10.0
libtpu: 0.0.40
codegen_flags: <defaults>
</compile_context>

<pallas_src>
import jax
import jax.numpy as jnp
import numpy as np
from jax.experimental import pallas as pl
from jax.experimental.pallas import tpu as pltpu


# ---------------------------------------------------------------------------
# Pallas kernel: full (fused) Decoder forward for one batch tile.
# Weights/biases use constant index_maps (grid-invariant, VMEM-resident).
# ---------------------------------------------------------------------------
def decoder_kernel(
    x_ref,             # [tb, d_in]   f32
    w1_ref, b1_ref,    # fused (self.linear @ decoder[0]) : d_in -> H1p, then ReLU
    w2_ref, b2_ref,    # decoder[1]                       : H1p  -> H0p, then ReLU
    w3_ref, b3_ref,    # self.output                      : H0p  -> d_out
    out_ref,           # [tb, d_out]  f32
):
    f32 = jnp.float32
    x = x_ref[...]
    # fused self.linear + decoder[0] Linear, followed by decoder[0]'s ReLU
    h = jnp.maximum(
        jnp.dot(x, w1_ref[...], preferred_element_type=f32) + b1_ref[...], 0.0)
    # decoder[1]: Linear + ReLU
    h = jnp.maximum(
        jnp.dot(h, w2_ref[...], preferred_element_type=f32) + b2_ref[...], 0.0)
    # self.output (output_activation_layer is never applied in forward)
    out_ref[...] = jnp.dot(h, w3_ref[...], preferred_element_type=f32) + b3_ref[...]


# ---------------------------------------------------------------------------
# Parameter preparation: fuse linear+decoder[0], zero-pad hidden dims to 128
# ---------------------------------------------------------------------------
def _round_up(n, m):
    return ((n + m - 1) // m) * m


def _pad2d(a, rows, cols):
    r, c = a.shape
    return jnp.pad(a, ((0, rows - r), (0, cols - c)))


def prepare_params(params):
    """params: (wl, bl, w0, b0, w1, b1, wo, bo); weights stored [in, out]
    (transposed vs torch.nn.Linear.weight), biases [1, out], all f32.
    Returns the packed operand tuple consumed by decoder_forward."""
    wl, bl, w0, b0, w1, b1, wo, bo = params
    d_in = wl.shape[0]
    h1 = w0.shape[1]
    h0 = w1.shape[1]
    d_out = wo.shape[1]

    hp = jax.lax.Precision.HIGHEST
    # No activation between self.linear and decoder[0] -> compose them in f32.
    wf = jnp.dot(wl, w0, precision=hp)          # (d_in, h1)
    bf = jnp.dot(bl, w0, precision=hp) + b0     # (1, h1)

    LANE = 128
    h1p = _round_up(h1, LANE)
    h0p = _round_up(h0, LANE)

    f32 = jnp.float32
    # Zero padding is exact: padded lanes stay 0 through bias-add and ReLU and
    # the matching padded weight rows contribute 0 to the next matmul.
    packed = (
        _pad2d(wf, d_in, h1p).astype(f32), _pad2d(bf, 1, h1p).astype(f32),
        _pad2d(w1, h1p, h0p).astype(f32), _pad2d(b1, 1, h0p).astype(f32),
        _pad2d(wo, h0p, d_out).astype(f32), _pad2d(bo, 1, d_out).astype(f32),
    )
    return packed


# ---------------------------------------------------------------------------
# Wrapper: batch-tiled pallas_call (input / output kept at natural widths)
# ---------------------------------------------------------------------------
def decoder_forward(x, packed, *, tile_b=None):
    """x: [B, d_in] f32. packed: output of prepare_params. Returns [B, d_out] f32."""
    w1p, b1p, w2p, b2p, w3p, b3p = packed
    B, d_in = x.shape
    assert w1p.shape[0] == d_in, "input_dim mismatch between x and params"
    h1p = w1p.shape[1]
    h0p = w2p.shape[1]
    d_out = w3p.shape[1]

    SUB = 8
    b8 = _round_up(max(B, 1), SUB)
    if tile_b is None:
        # One grid step for small batches; 1024-row tiles otherwise.
        tile_b = b8 if b8 <= 1024 else 1024
    tile_b = max(SUB, _round_up(tile_b, SUB))
    b_pad = _round_up(B, tile_b)
    grid = (b_pad // tile_b,)

    f32 = jnp.float32
    x_p = x.astype(f32)
    if b_pad != B:
        x_p = jnp.pad(x_p, ((0, b_pad - B), (0, 0)))

    # Grid-invariant weights/biases: constant index_map -> fetched once per call.
    weight_specs = [pl.BlockSpec(p.shape, lambda i: (0, 0)) for p in packed]

    flops = 2 * b_pad * (d_in * h1p + h1p * h0p + h0p * d_out)
    bytes_accessed = (
        b_pad * d_in * 4
        + sum(int(p.size) * p.dtype.itemsize for p in packed)
        + b_pad * d_out * 4
    )

    # Only a multi-step grid can be sharded across v7x's two TensorCores.
    dim_sem = (pltpu.CORE_PARALLEL,) if grid[0] > 1 else (pltpu.ARBITRARY,)

    # v5e's default scoped-VMEM limit is 16 MiB; raise it only if a very large
    # tile / hidden size would actually need it (never at these sizes).
    vmem_est = (
        2 * tile_b * (d_in + d_out) * 4           # double-buffered x / out tiles
        + 3 * tile_b * max(h1p, h0p) * 4          # in-kernel f32 intermediates
        + 2 * sum(int(p.size) * p.dtype.itemsize for p in packed)
    )
    cp_kwargs = dict(dimension_semantics=dim_sem)
    if vmem_est > 12 * 1024 * 1024:
        cp_kwargs["vmem_limit_bytes"] = int(min(2 * vmem_est, 64 * 1024 * 1024))

    out = pl.pallas_call(
        decoder_kernel,
        out_shape=jax.ShapeDtypeStruct((b_pad, d_out), f32),
        grid_spec=pltpu.PrefetchScalarGridSpec(
            num_scalar_prefetch=0,
            grid=grid,
            in_specs=[pl.BlockSpec((tile_b, d_in), lambda i: (i, 0))] + weight_specs,
            out_specs=pl.BlockSpec((tile_b, d_out), lambda i: (i, 0)),
        ),
        compiler_params=pltpu.CompilerParams(**cp_kwargs),
        cost_estimate=pl.CostEstimate(
            flops=flops, transcendentals=0, bytes_accessed=bytes_accessed),
    )(x_p, *packed)

    # Padded batch rows hold bias-driven garbage -> must stay sliced off.
    return out[:B] if b_pad != B else out


# ---------------------------------------------------------------------------
# Deterministic parameter construction (shapes from Decoder.__init__)
# ---------------------------------------------------------------------------
def init_params(key, output_dim, hidden_layers_dim, input_dim):
    h0, h1 = hidden_layers_dim      # layers_dim = [h0, h1]; decoder stack uses [::-1]

    def lin(k, fan_in, fan_out):
        kw, kb = jax.random.split(k)
        w = jax.random.normal(kw, (fan_in, fan_out), jnp.float32) * 0.1
        b = jax.random.normal(kb, (1, fan_out), jnp.float32) * 0.01
        return w, b

    ks = jax.random.split(key, 4)
    wl, bl = lin(ks[0], input_dim, h1)    # self.linear : input_dim -> layers_dim[-1]
    w0, b0 = lin(ks[1], h1, h1)           # decoder[0]  : h1 -> h1, ReLU
    w1, b1 = lin(ks[2], h1, h0)           # decoder[1]  : h1 -> h0, ReLU
    wo, bo = lin(ks[3], h0, output_dim)   # self.output : h0 -> output_dim
    return (wl, bl, w0, b0, w1, b1, wo, bo)


def reference_forward(x, params):
    """Faithful f32 reference of Decoder.forward (no bf16 anywhere)."""
    wl, bl, w0, b0, w1, b1, wo, bo = params
    hp = jax.lax.Precision.HIGHEST
    h = jnp.dot(x, wl, precision=hp) + bl
    h = jnp.maximum(jnp.dot(h, w0, precision=hp) + b0, 0.0)
    h = jnp.maximum(jnp.dot(h, w1, precision=hp) + b1, 0.0)
    return jnp.dot(h, wo, precision=hp) + bo


if __name__ == "__main__":
    output_dim = 32
    hidden_layers_dim = [64, 32]
    input_dim = 8            # latent dimension fed into the Decoder
    batch = 16

    key = jax.random.PRNGKey(0)
    k_x, k_p, k_x2 = jax.random.split(key, 3)
    params = init_params(k_p, output_dim, hidden_layers_dim, input_dim)
    packed = prepare_params(params)

    # Tolerance covers the compiler's freedom in f32 MXU pass decomposition and
    # the wrapper-side (wl @ w0) re-association; well below structural-bug error.
    rtol, atol = 2e-2, 5e-3

    # Case 1: sublane-aligned small batch (single grid step).
    x = jax.random.normal(k_x, (batch, input_dim), jnp.float32)
    out = decoder_forward(x, packed)
    jax.block_until_ready(out)
    np.testing.assert_allclose(np.asarray(out), np.asarray(reference_forward(x, params)),
                               rtol=rtol, atol=atol)

    # Case 2: ragged batch (exercises batch padding + the final slice-off).
    x2 = jax.random.normal(k_x2, (13, input_dim), jnp.float32)
    out2 = decoder_forward(x2, packed)
    jax.block_until_ready(out2)
    np.testing.assert_allclose(np.asarray(out2), np.asarray(reference_forward(x2, params)),
                               rtol=rtol, atol=atol)

    print("KERNEL_OK")
</pallas_src>

<mosaic_0001>
module attributes {stable_mosaic.version = 11 : i64} {
  func.func @decoder_kernel(%arg0: i32, %arg1: memref<16x8xf32, #tpu.memory_space<vmem>>, %arg2: memref<8x128xf32, #tpu.memory_space<vmem>>, %arg3: memref<1x128xf32, #tpu.memory_space<vmem>>, %arg4: memref<128x128xf32, #tpu.memory_space<vmem>>, %arg5: memref<1x128xf32, #tpu.memory_space<vmem>>, %arg6: memref<128x32xf32, #tpu.memory_space<vmem>>, %arg7: memref<1x32xf32, #tpu.memory_space<vmem>>, %arg8: memref<16x32xf32, #tpu.memory_space<vmem>>) attributes {dimension_semantics = [#tpu.dimension_semantics<arbitrary>], iteration_bounds = array<i64: 1>, scalar_prefetch = 0 : i64, scratch_operands = 0 : i64, tpu.core_type = #tpu.core_type<tc>, window_params = [{transform_indices = @transform_0, window_bounds = array<i64: 16, 8>}, {pipeline_mode = #tpu.pipeline_mode<synchronous>, transform_indices = @transform_1, window_bounds = array<i64: 8, 128>}, {pipeline_mode = #tpu.pipeline_mode<synchronous>, transform_indices = @transform_2, window_bounds = array<i64: 1, 128>}, {pipeline_mode = #tpu.pipeline_mode<synchronous>, transform_indices = @transform_3, window_bounds = array<i64: 128, 128>}, {pipeline_mode = #tpu.pipeline_mode<synchronous>, transform_indices = @transform_4, window_bounds = array<i64: 1, 128>}, {pipeline_mode = #tpu.pipeline_mode<synchronous>, transform_indices = @transform_5, window_bounds = array<i64: 128, 32>}, {pipeline_mode = #tpu.pipeline_mode<synchronous>, transform_indices = @transform_6, window_bounds = array<i64: 1, 32>}, {transform_indices = @transform_7, window_bounds = array<i64: 16, 32>}]} {
    %c0 = arith.constant 0 : index
    %c0_0 = arith.constant 0 : index
    %0 = vector.load %arg1[%c0, %c0_0] : memref<16x8xf32, #tpu.memory_space<vmem>>, vector<16x8xf32>
    %c0_1 = arith.constant 0 : index
    %c0_2 = arith.constant 0 : index
    %1 = vector.load %arg2[%c0_1, %c0_2] : memref<8x128xf32, #tpu.memory_space<vmem>>, vector<8x128xf32>
    %cst = arith.constant dense<0.000000e+00> : vector<16x128xf32>
    %2 = tpu.matmul %0, %1, %cst {dimension_numbers = #tpu.dot_dimension_numbers<[1], [0], [0], [1], [0, 0, 1, 1], [], []>} : vector<16x8xf32>, vector<8x128xf32>, vector<16x128xf32> -> vector<16x128xf32>
    %c0_3 = arith.constant 0 : index
    %c0_4 = arith.constant 0 : index
    %3 = vector.load %arg3[%c0_3, %c0_4] : memref<1x128xf32, #tpu.memory_space<vmem>>, vector<1x128xf32>
    %4 = vector.broadcast %3 : vector<1x128xf32> to vector<16x128xf32>
    %5 = arith.addf %2, %4 : vector<16x128xf32>
    %cst_5 = arith.constant 0.000000e+00 : f32
    %6 = vector.broadcast %cst_5 : f32 to vector<16x128xf32>
    %7 = arith.maximumf %5, %6 : vector<16x128xf32>
    %c0_6 = arith.constant 0 : index
    %c0_7 = arith.constant 0 : index
    %8 = vector.load %arg4[%c0_6, %c0_7] : memref<128x128xf32, #tpu.memory_space<vmem>>, vector<128x128xf32>
    %cst_8 = arith.constant dense<0.000000e+00> : vector<16x128xf32>
    %9 = tpu.matmul %7, %8, %cst_8 {dimension_numbers = #tpu.dot_dimension_numbers<[1], [0], [0], [1], [0, 0, 1, 1], [], []>} : vector<16x128xf32>, vector<128x128xf32>, vector<16x128xf32> -> vector<16x128xf32>
    %c0_9 = arith.constant 0 : index
    %c0_10 = arith.constant 0 : index
    %10 = vector.load %arg5[%c0_9, %c0_10] : memref<1x128xf32, #tpu.memory_space<vmem>>, vector<1x128xf32>
    %11 = vector.broadcast %10 : vector<1x128xf32> to vector<16x128xf32>
    %12 = arith.addf %9, %11 : vector<16x128xf32>
    %cst_11 = arith.constant 0.000000e+00 : f32
    %13 = vector.broadcast %cst_11 : f32 to vector<16x128xf32>
    %14 = arith.maximumf %12, %13 : vector<16x128xf32>
    %c0_12 = arith.constant 0 : index
    %c0_13 = arith.constant 0 : index
    %15 = vector.load %arg6[%c0_12, %c0_13] : memref<128x32xf32, #tpu.memory_space<vmem>>, vector<128x32xf32>
    %cst_14 = arith.constant dense<0.000000e+00> : vector<16x32xf32>
    %16 = tpu.matmul %14, %15, %cst_14 {dimension_numbers = #tpu.dot_dimension_numbers<[1], [0], [0], [1], [0, 0, 1, 1], [], []>} : vector<16x128xf32>, vector<128x32xf32>, vector<16x32xf32> -> vector<16x32xf32>
    %c0_15 = arith.constant 0 : index
    %c0_16 = arith.constant 0 : index
    %17 = vector.load %arg7[%c0_15, %c0_16] : memref<1x32xf32, #tpu.memory_space<vmem>>, vector<1x32xf32>
    %18 = vector.broadcast %17 : vector<1x32xf32> to vector<16x32xf32>
    %19 = arith.addf %16, %18 : vector<16x32xf32>
    %c0_17 = arith.constant 0 : index
    %c0_18 = arith.constant 0 : index
    %20 = vector.load %arg8[%c0_17, %c0_18] : memref<16x32xf32, #tpu.memory_space<vmem>>, vector<16x32xf32>
    tpu.vector_store %arg8[%c0_17, %c0_18], %19 {strides = array<i32>} : memref<16x32xf32, #tpu.memory_space<vmem>>, vector<16x32xf32>,
    return
  }
  func.func @transform_0(%arg0: i32) -> (i32, i32) {
    %c0_i32 = arith.constant 0 : i32
    %c0_i32_0 = arith.constant 0 : i32
    return %arg0, %c0_i32 : i32, i32
  }
  func.func @transform_1(%arg0: i32) -> (i32, i32) {
    %c0_i32 = arith.constant 0 : i32
    %c0_i32_0 = arith.constant 0 : i32
    %c0_i32_1 = arith.constant 0 : i32
    return %c0_i32, %c0_i32_0 : i32, i32
  }
  func.func @transform_2(%arg0: i32) -> (i32, i32) {
    %c0_i32 = arith.constant 0 : i32
    %c0_i32_0 = arith.constant 0 : i32
    %c0_i32_1 = arith.constant 0 : i32
    return %c0_i32, %c0_i32_0 : i32, i32
  }
  func.func @transform_3(%arg0: i32) -> (i32, i32) {
    %c0_i32 = arith.constant 0 : i32
    %c0_i32_0 = arith.constant 0 : i32
    %c0_i32_1 = arith.constant 0 : i32
    return %c0_i32, %c0_i32_0 : i32, i32
  }
  func.func @transform_4(%arg0: i32) -> (i32, i32) {
    %c0_i32 = arith.constant 0 : i32
    %c0_i32_0 = arith.constant 0 : i32
    %c0_i32_1 = arith.constant 0 : i32
    return %c0_i32, %c0_i32_0 : i32, i32
  }
  func.func @transform_5(%arg0: i32) -> (i32, i32) {
    %c0_i32 = arith.constant 0 : i32
    %c0_i32_0 = arith.constant 0 : i32
    %c0_i32_1 = arith.constant 0 : i32
    return %c0_i32, %c0_i32_0 : i32, i32
  }
  func.func @transform_6(%arg0: i32) -> (i32, i32) {
    %c0_i32 = arith.constant 0 : i32
    %c0_i32_0 = arith.constant 0 : i32
    %c0_i32_1 = arith.constant 0 : i32
    return %c0_i32, %c0_i32_0 : i32, i32
  }
  func.func @transform_7(%arg0: i32) -> (i32, i32) {
    %c0_i32 = arith.constant 0 : i32
    %c0_i32_0 = arith.constant 0 : i32
    return %arg0, %c0_i32 : i32, i32
  }
}

</mosaic_0001>

<bundles_post_ra>
// kernel: tpu_custom_call.1
= control target key start
LH: loop header
LB: loop body
LE: loop exit
PB: predicated region body
PF: predicated region fallthrough
CT: control target
= control target key end

     0   :  { %vm34_vm0 = vcmask 64512   ;;  %s403_s0 = inlined_call_operand.vmem [shape: f32[16,8], index: 0, kind: input, shape index: {}]   ;;  %s404_s1 = inlined_call_operand.vmem [shape: f32[8,128], index: 1, kind: input, shape index: {}]   ;;  %s405_s2 = inlined_call_operand.vmem [shape: f32[1,128], index: 2, kind: input, shape index: {}]   ;;  %s406_s3 = inlined_call_operand.vmem [shape: f32[128,128], index: 3, kind: input, shape index: {}]   ;;  %s407_s4 = inlined_call_operand.vmem [shape: f32[1,128], index: 4, kind: input, shape index: {}]   ;;  %s408_s5 = inlined_call_operand.vmem [shape: f32[128,32], index: 5, kind: input, shape index: {}]   ;;  %s409_s6 = inlined_call_operand.vmem [shape: f32[1,32], index: 6, kind: input, shape index: {}]   ;;  %s410_s7 = inlined_call_operand.hbm [shape: f32[16,32], index: 7, kind: output, shape index: {}]  }
   0x1   :  { %v29_v0 = vld [vmem:[%s404_s1] sm:$0xff]  ;;  %v81_v2 = vld [vmem:[%s406_s3 + $0x78] sm:$0xff]  ;;  %v80_v3 = vld [vmem:[%s406_s3 + $0x70] sm:$0xff] }
   0x2   :  { %v27_v1 = vld [vmem:[%s403_s0] sm:$0xff]  ;;  %56 = vmatpush.msra.mxu0 %v29_v0  ;;  %86 = vmatpush.msra.mxu1 %v81_v2  ;;  %v79_v4 = vld [vmem:[%s406_s3 + $0x68] sm:$0xff] }
   0x3   :  { %175 = vmatmul.msk.f32.vlgmr.msra.gmra.mxu0 %vm34_vm0, %v27_v1  ;;  %177 = vmatpush.msra.mxu3 %v81_v2  ;;  %v78_v5 = vld [vmem:[%s406_s3 + $0x60] sm:$0xff] }
   0x4   :  { %87 = vmatpush.msra.mxu1 %v80_v3 }
   0x5   :  { %178 = vmatpush.msra.mxu3 %v80_v3 }
   0x6   :  { %88 = vmatpush.msra.mxu1 %v79_v4 }
   0x7   :  { %12 = vsyncpa [#allocation3], 0  ;;  %v28_v6 = vld [vmem:[%s403_s0 + $0x8] sm:$0xff]  ;;  %v77_v7 = vld [vmem:[%s406_s3 + $0x58] sm:$0xff]  ;;  %179 = vmatpush.msra.mxu3 %v79_v4  ;;  %vm154_vm1 = vcmask 261120   ;;  %s163_s24 = sshll.u32 %s410_s7, 4  ;;  %s164_s24 = int_to_ptr.hbm [resolvable:$true] %s163_s24 }
   0x8   :  { %89 = vmatpush.msra.mxu1 %v78_v5  ;;  %v76_v8 = vld [vmem:[%s406_s3 + $0x50] sm:$0xff]  ;;  %v75_v9 = vld [vmem:[%s406_s3 + $0x48] sm:$0xff]  ;;  %v74_v10 = vld [vmem:[%s406_s3 + $0x40] sm:$0xff]  ;;  %s242_s25 = smov 128   ;;  %s243_s26 = smov 8  }
   0x9   :  { %180 = vmatpush.msra.mxu3 %v78_v5  ;;  %v73_v11 = vld [vmem:[%s406_s3 + $0x38] sm:$0xff]  ;;  %v72_v12 = vld [vmem:[%s406_s3 + $0x30] sm:$0xff]  ;;  %v71_v13 = vld [vmem:[%s406_s3 + $0x28] sm:$0xff] }
   0xa   :  { %90 = vmatpush.msra.mxu1 %v77_v7  ;;  %v70_v14 = vld [vmem:[%s406_s3 + $0x20] sm:$0xff]  ;;  %v69_v15 = vld [vmem:[%s406_s3 + $0x18] sm:$0xff]  ;;  %v68_v16 = vld [vmem:[%s406_s3 + $0x10] sm:$0xff] }
   0xb   :  { %176 = vmatmul.msk.f32.gmra.mxu0 %vm34_vm0, %v28_v6  ;;  %181 = vmatpush.msra.mxu3 %v77_v7  ;;  %v67_v17 = vld [vmem:[%s406_s3 + $0x8] sm:$0xff]  ;;  %v66_v18 = vld [vmem:[%s406_s3] sm:$0xff]  ;;  %v126_v19 = vld [vmem:[%s408_s5 + $0x78] sm:$0xff] }
   0xc   :  { %91 = vmatpush.msra.mxu1 %v76_v8  ;;  %v125_v20 = vld [vmem:[%s408_s5 + $0x70] sm:$0xff]  ;;  %131 = vmatpush.msrb.mxu0 %v126_v19  ;;  %v124_v21 = vld [vmem:[%s408_s5 + $0x68] sm:$0xff]  ;;  %v123_v22 = vld [vmem:[%s408_s5 + $0x60] sm:$0xff] }
   0xd   :  { %182 = vmatpush.msra.mxu3 %v76_v8  ;;  %193 = vmatpush.msra.mxu2 %v126_v19  ;;  %v122_v23 = vld [vmem:[%s408_s5 + $0x58] sm:$0xff]  ;;  %v121_v24 = vld [vmem:[%s408_s5 + $0x50] sm:$0xff]  ;;  %v120_v25 = vld [vmem:[%s408_s5 + $0x48] sm:$0xff] }
   0xe   :  { %92 = vmatpush.msra.mxu1 %v75_v9  ;;  %132 = vmatpush.msrb.mxu0 %v125_v20  ;;  %v119_v26 = vld [vmem:[%s408_s5 + $0x40] sm:$0xff]  ;;  %v118_v27 = vld [vmem:[%s408_s5 + $0x38] sm:$0xff]  ;;  %v117_v29 = vld [vmem:[%s408_s5 + $0x30] sm:$0xff] }
   0xf   :  { %183 = vmatpush.msra.mxu3 %v75_v9  ;;  %194 = vmatpush.msra.mxu2 %v125_v20  ;;  %v212_v28 = vld [vmem:[%s405_s2] ss:$0 sm:$0xff]  ;;  %v116_v30 = vld [vmem:[%s408_s5 + $0x28] sm:$0xff]  ;;  %v114_v35 = vld [vmem:[%s408_s5 + $0x18] sm:$0xff] }
  0x10   :  { %93 = vmatpush.msra.mxu1 %v74_v10  ;;  %133 = vmatpush.msrb.mxu0 %v124_v21  ;;  %v115_v33 = vld [vmem:[%s408_s5 + $0x20] sm:$0xff]  ;;  %v113_v39 = vld [vmem:[%s408_s5 + $0x10] sm:$0xff]  ;;  %v112_v40 = vld [vmem:[%s408_s5 + $0x8] sm:$0xff] }
  0x11   :  { %184 = vmatpush.msra.mxu3 %v74_v10  ;;  %195 = vmatpush.msra.mxu2 %v124_v21  ;;  %v111_v41 = vld [vmem:[%s408_s5] sm:$0xff]  ;;  %s241_s5 = smov [#allocation2]  }
  0x12   :  { %94 = vmatpush.msra.mxu1 %v73_v11  ;;  %134 = vmatpush.msrb.mxu0 %v123_v22  ;;  %v213_v42 = vld [vmem:[%s407_s4] ss:$0 sm:$0xff]  ;;  %s161_s22 = sshll.u32 %s241_s5, 4  ;;  %s162_s22 = int_to_ptr.vmem [resolvable:$true] %s161_s22 }
  0x13   :  { %185 = vmatpush.msra.mxu3 %v73_v11  ;;  %196 = vmatpush.msra.mxu2 %v123_v22  ;;  %v214_v49 = vld [vmem:[%s409_s6] ss:$0 sm:$0xff] }
  0x14   :  { %95 = vmatpush.msra.mxu1 %v72_v12  ;;  %135 = vmatpush.msrb.mxu0 %v122_v23 }
  0x15   :  { %186 = vmatpush.msra.mxu3 %v72_v12  ;;  %197 = vmatpush.msra.mxu2 %v122_v23 }
  0x16   :  { %96 = vmatpush.msra.mxu1 %v71_v13  ;;  %136 = vmatpush.msrb.mxu0 %v121_v24 }
  0x17   :  { %187 = vmatpush.msra.mxu3 %v71_v13  ;;  %198 = vmatpush.msra.mxu2 %v121_v24 }
  0x18   :  { %97 = vmatpush.msra.mxu1 %v70_v14  ;;  %137 = vmatpush.msrb.mxu0 %v120_v25 }
  0x19   :  { %188 = vmatpush.msra.mxu3 %v70_v14  ;;  %199 = vmatpush.msra.mxu2 %v120_v25 }
  0x1a   :  { %98 = vmatpush.msra.mxu1 %v69_v15  ;;  %138 = vmatpush.msrb.mxu0 %v119_v26 }
  0x1b   :  { %189 = vmatpush.msra.mxu3 %v69_v15  ;;  %200 = vmatpush.msra.mxu2 %v119_v26 }
  0x1c   :  { %99 = vmatpush.msra.mxu1 %v68_v16  ;;  %139 = vmatpush.msrb.mxu0 %v118_v27 }
  0x1d   :  { %190 = vmatpush.msra.mxu3 %v68_v16  ;;  %201 = vmatpush.msra.mxu2 %v118_v27 }
  0x1e   :  { %100 = vmatpush.msra.mxu1 %v67_v17  ;;  %140 = vmatpush.msrb.mxu0 %v117_v29 }
  0x1f   :  { %191 = vmatpush.msra.mxu3 %v67_v17  ;;  %202 = vmatpush.msra.mxu2 %v117_v29 }
  0x20   :  { %101 = vmatpush.msra.mxu1 %v66_v18  ;;  %141 = vmatpush.msrb.mxu0 %v116_v30 }
  0x21   :  { %192 = vmatpush.msra.mxu3 %v66_v18  ;;  %203 = vmatpush.msra.mxu2 %v116_v30 }
  0x22   :  { %142 = vmatpush.msrb.mxu0 %v115_v33 }
  0x23   :  { %204 = vmatpush.msra.mxu2 %v115_v33 }
  0x24   :  { %143 = vmatpush.msrb.mxu0 %v114_v35 }
  0x25   :  { %205 = vmatpush.msra.mxu2 %v114_v35 }
  0x26   :  { %144 = vmatpush.msrb.mxu0 %v113_v39 }
  0x27   :  { %206 = vmatpush.msra.mxu2 %v113_v39 }
  0x28   :  { %145 = vmatpush.msrb.mxu0 %v112_v40 }
  0x29   :  { %207 = vmatpush.msra.mxu2 %v112_v40 }
  0x2a   :  { %146 = vmatpush.msrb.mxu0 %v111_v41 }
  0x2b   :  { %208 = vmatpush.msra.mxu2 %v111_v41 }
  0x80   :  { %v58_v31 = vpop.f32.mrf.mxu0 }
  0x81   :  { %v59_v32 = vadd.f32 %v212_v28, %v58_v31 }
  0x83   :  { %v64_v34 = vmax.f32 %v59_v32, 0.0 }
  0x85   :  { %102 = vmatmul.f32.vlgmr.msra.gmra.mxu1 %v64_v34 }
  0x88   :  { %v61_v36 = vpop.f32.mrf.mxu0 }
  0x89   :  { %v62_v37 = vadd.f32 %v212_v28, %v61_v36 }
  0x8b   :  { %v65_v38 = vmax.f32 %v62_v37, 0.0 }
  0x8d   :  { %105 = vmatmul.f32.vlgmr.msra.gmra.mxu3 %v65_v38 }
 0x102   :  { %v103_v43 = vpop.f32.mrf.mxu1 }
 0x103   :  { %v104_v44 = vadd.f32 %v213_v42, %v103_v43 }
 0x105   :  { %v109_v45 = vmax.f32 %v104_v44, 0.0 }
 0x107   :  { %147 = vmatmul.f32.vlgmr.msrb.gmra.mxu0 %v109_v45 }
 0x110   :  { %v106_v46 = vpop.f32.mrf.mxu3 }
 0x111   :  { %v107_v47 = vadd.f32 %v213_v42, %v106_v46 }
 0x113   :  { %v110_v48 = vmax.f32 %v107_v47, 0.0 }
 0x115   :  { %150 = vmatmul.f32.vlgmr.msra.gmra.mxu2 %v110_v48 }
 0x184   :  { %v148_v50 = vpop.f32.mrf.mxu0 }
 0x185   :  { %v149_v51 = vadd.f32 %v214_v49, %v148_v50 }
 0x187   :  { %155 = vst.msk [vmem:[#allocation2] sm:$0xff] %vm154_vm1, %v149_v51 }
 0x198   :  { %v151_v52 = vpop.f32.mrf.mxu2 }
 0x199   :  { %v152_v53 = vadd.f32 %v214_v49, %v151_v52 }
 0x19b   :  { %156 = vst.msk [vmem:[#allocation2 + $0x8] sm:$0xff] %vm154_vm1, %v152_v53 }
 0x19c   :  { %169 = dma.vmem_to_hbm [thread:$0]  %s162_s22, 256, %s164_s24, [#allocation3], %s242_s25, %s242_s25, %s243_s26  }
 0x19d   :  { %239 = dma.done.wait [#allocation3], 256  }
 0x19e   :  { %240 = vsyncadd [#allocation3], 4294967040 }
 0x19f   :  { %174 = vsyncpa [#allocation3], 1 }

</bundles_post_ra>
